<compile_context>
chip_gen: v7x
topology: tpu7x:2x2x1
jax: 0.10.0
libtpu: 0.0.40
codegen_flags: <defaults>
</compile_context>

<pallas_src>
import functools

import jax
import jax.numpy as jnp
from jax.experimental import pallas as pl
from jax.experimental.pallas import tpu as pltpu

LANES = 128
SUBLANES = 8
DEFAULT_BLOCK_ROWS = 4096   # 4096x128 f32 = 2 MiB per input per pipeline buffer
DEFAULT_CHUNK_ROWS = 512    # inner-loop chunk: bounds f32 temporaries to ~256 KiB each
VMEM_LIMIT_BYTES = 32 * 1024 * 1024


def _dice_bce_kernel(rows_total, br, chunk_rows, n_chunks, tiles_per_core,
                     need_mask, binary_targets,
                     x_ref, t_ref, o_inter, o_sxt, o_bce,
                     inter_acc, sxt_acc, bce_acc):
    c = pl.program_id(0)          # "parallel" axis (TensorCore split on v7x)
    step = pl.program_id(1)       # "arbitrary" reduction axis
    block_global = c * tiles_per_core + step

    @pl.when(step == 0)
    def _():
        inter_acc[...] = jnp.zeros_like(inter_acc)
        sxt_acc[...] = jnp.zeros_like(sxt_acc)
        bce_acc[...] = jnp.zeros_like(bce_acc)

    def fold(v):
        # (chunk_rows, 128) -> (8, 128): pure VPU adds; the single cross-lane
        # XLU reduction is deferred to the per-core epilogue.
        return jnp.sum(v.reshape(chunk_rows // SUBLANES, SUBLANES, LANES), axis=0)

    def accumulate(masked):
        def chunk_body(j, carry):
            ci, cs, cb = carry
            start = j * chunk_rows
            if not isinstance(start, int):
                start = pl.multiple_of(start, chunk_rows)
            x = x_ref[pl.ds(start, chunk_rows), :].astype(jnp.float32)
            tg = t_ref[pl.ds(start, chunk_rows), :].astype(jnp.float32)
            if masked:
                # Rows past the logical array end are Pallas block padding with
                # unspecified contents; zero them BEFORE any log so they
                # contribute exactly 0 (and never produce NaNs).
                row_ids = jax.lax.broadcasted_iota(jnp.int32, (chunk_rows, LANES), 0)
                valid = (row_ids + (block_global * br + j * chunk_rows)) < rows_total
                x = jnp.where(valid, x, 0.0)
                tg = jnp.where(valid, tg, 0.0)
            if binary_targets:
                # Single transcendental per element; exact only for hard {0,1}
                # targets. (Sign flipped vs BCE; negated in the finalize.)
                bce_pos = jnp.maximum(jnp.log(jnp.where(tg > 0.5, x, 1.0 - x)), -100.0)
            else:
                # Exact PyTorch BCE with the -100 log clamp, factored as
                # log(1-x) + t*(log x - log(1-x)) to shave VALU ops; x=t=0
                # padding contributes exactly 0.
                log_p = jnp.maximum(jnp.log(x), -100.0)
                log_1mp = jnp.maximum(jnp.log(1.0 - x), -100.0)
                bce_pos = log_1mp + tg * (log_p - log_1mp)
            return (ci + fold(x * tg), cs + fold(x + tg), cb + fold(bce_pos))

        zeros = jnp.zeros((SUBLANES, LANES), jnp.float32)
        init = (zeros, zeros, zeros)
        if n_chunks == 1:
            ci, cs, cb = chunk_body(0, init)
        else:
            ci, cs, cb = jax.lax.fori_loop(0, n_chunks, chunk_body, init)
        inter_acc[...] += ci
        sxt_acc[...] += cs
        bce_acc[...] += cb

    if need_mask:
        # Only blocks that actually contain padding pay for the mask.
        blk_needs_mask = (block_global + 1) * br > rows_total

        @pl.when(blk_needs_mask)
        def _():
            accumulate(masked=True)

        @pl.when(jnp.logical_not(blk_needs_mask))
        def _():
            accumulate(masked=False)
    else:
        accumulate(masked=False)

    @pl.when(step == tiles_per_core - 1)
    def _():
        # Per-core partial sums; cross-core combine + dice/BCE finalize is in
        # plain JAX outside the kernel.
        o_inter[...] = jnp.sum(inter_acc[...]).reshape(1, 1, 1)
        o_sxt[...] = jnp.sum(sxt_acc[...]).reshape(1, 1, 1)
        o_bce[...] = jnp.sum(bce_acc[...]).reshape(1, 1, 1)


def dice_bce_loss(inputs, targets, smooth=1.0, *,
                  block_rows=DEFAULT_BLOCK_ROWS,
                  chunk_rows=DEFAULT_CHUNK_ROWS,
                  num_cores=2,
                  assume_binary_targets=False):
    """inputs/targets: matching shapes; probabilities in [0,1] / labels."""
    assert inputs.shape == targets.shape
    x = inputs.reshape(-1)   # keep native dtype (bf16-friendly); kernel upcasts
    t = targets.reshape(-1)
    n_total = x.shape[0]
    n_main = (n_total // LANES) * LANES
    n_tail = n_total - n_main

    # <=127-element ragged tail reduced in plain JAX: avoids a full jnp.pad
    # copy of both inputs; for lane-aligned sizes this branch vanishes.
    if n_tail:
        xt = x[n_main:].astype(jnp.float32)
        tt = t[n_main:].astype(jnp.float32)
        tail_inter = jnp.sum(xt * tt)
        tail_sxt = jnp.sum(xt) + jnp.sum(tt)
        lp = jnp.maximum(jnp.log(xt), -100.0)
        l1 = jnp.maximum(jnp.log(1.0 - xt), -100.0)
        tail_bce = jnp.sum(l1 + tt * (lp - l1))
    else:
        tail_inter = tail_sxt = tail_bce = jnp.float32(0.0)

    if n_main == 0:
        inter, sxt, bce_pos = tail_inter, tail_sxt, tail_bce
    else:
        rows = n_main // LANES
        xm = x if n_tail == 0 else x[:n_main]
        tm = t if n_tail == 0 else t[:n_main]
        x2 = xm.reshape(rows, LANES)   # zero-copy view for lane-aligned sizes
        t2 = tm.reshape(rows, LANES)

        # Block geometry: big lane-dense blocks (amortize ~0.35us/step), with a
        # chunked inner loop; everything a multiple of 8 sublanes.
        chunk = max(SUBLANES, (chunk_rows // SUBLANES) * SUBLANES)
        rows8 = ((rows + SUBLANES - 1) // SUBLANES) * SUBLANES
        if rows8 <= chunk:
            chunk = rows8
            br = rows8
            n_chunks = 1
        else:
            br_cap = max(chunk, (block_rows // chunk) * chunk)
            br = min(br_cap, (rows8 // chunk) * chunk)
            n_chunks = br // chunk

        n_tiles = pl.cdiv(rows, br)
        ncores = max(1, int(num_cores))
        ncores = min(ncores, n_tiles)          # no idle/redundant cores
        tpc = pl.cdiv(n_tiles, ncores)
        need_mask = (rows % br != 0) or (ncores * tpc != n_tiles)

        if ncores * tpc == n_tiles:
            in_map = lambda c, s: (c * tpc + s, 0)
        else:
            last = n_tiles - 1
            in_map = lambda c, s: (jnp.minimum(c * tpc + s, last), 0)

        kernel = functools.partial(
            _dice_bce_kernel, rows, br, chunk, n_chunks, tpc,
            bool(need_mask), bool(assume_binary_targets))

        out_block = pl.BlockSpec((1, 1, 1), lambda c, s: (c, 0, 0))
        partial_shape = jax.ShapeDtypeStruct((ncores, 1, 1), jnp.float32)

        inter_p, sxt_p, bce_p = pl.pallas_call(
            kernel,
            out_shape=(partial_shape, partial_shape, partial_shape),
            grid_spec=pltpu.PrefetchScalarGridSpec(
                num_scalar_prefetch=0,
                grid=(ncores, tpc),
                in_specs=[
                    pl.BlockSpec((br, LANES), in_map),
                    pl.BlockSpec((br, LANES), in_map),
                ],
                out_specs=[out_block, out_block, out_block],
                scratch_shapes=[
                    pltpu.VMEM((SUBLANES, LANES), jnp.float32),  # intersection
                    pltpu.VMEM((SUBLANES, LANES), jnp.float32),  # sum(x)+sum(t)
                    pltpu.VMEM((SUBLANES, LANES), jnp.float32),  # BCE elem sum
                ],
            ),
            compiler_params=pltpu.CompilerParams(
                dimension_semantics=("parallel", "arbitrary"),
                vmem_limit_bytes=VMEM_LIMIT_BYTES),
        )(x2, t2)

        inter = jnp.sum(inter_p) + tail_inter
        sxt = jnp.sum(sxt_p) + tail_sxt
        bce_pos = jnp.sum(bce_p) + tail_bce

    dice_loss = 1.0 - (2.0 * inter + smooth) / (sxt + smooth)
    bce_mean = -bce_pos / jnp.float32(n_total)
    return (bce_mean + dice_loss).astype(jnp.float32)


def _reference(inputs, targets, smooth=1.0):
    x = inputs.reshape(-1).astype(jnp.float32)
    t = targets.reshape(-1).astype(jnp.float32)
    inter = jnp.sum(x * t)
    dice = 1.0 - (2.0 * inter + smooth) / (jnp.sum(x) + jnp.sum(t) + smooth)
    log_p = jnp.maximum(jnp.log(x), -100.0)
    log_1mp = jnp.maximum(jnp.log(1.0 - x), -100.0)
    bce = jnp.mean(-(t * log_p + (1.0 - t) * log_1mp))
    return bce + dice


if __name__ == "__main__":
    key = jax.random.PRNGKey(0)
    k1, k2, k3, k4 = jax.random.split(key, 4)

    # Main NCHW example: predicted probabilities and binary targets.
    shape = (2, 4, 16, 16)
    inputs = jax.random.uniform(k1, shape, dtype=jnp.float32,
                                minval=1e-4, maxval=1.0 - 1e-4)
    targets = (jax.random.uniform(k2, shape) > 0.5).astype(jnp.float32)
    ref = _reference(inputs, targets, smooth=1.0)

    loss = dice_bce_loss(inputs, targets, smooth=1.0)
    jax.block_until_ready(loss)
    assert jnp.allclose(loss, ref, rtol=1e-5, atol=1e-5), (loss, ref)

    # Cross-step accumulation along the "arbitrary" axis (single core, tiny
    # blocks) and the 2-core "parallel" split (grid (2, 1)).
    loss_seq = dice_bce_loss(inputs, targets, smooth=1.0,
                             block_rows=8, chunk_rows=8, num_cores=1)
    loss_par = dice_bce_loss(inputs, targets, smooth=1.0,
                             block_rows=8, chunk_rows=8, num_cores=2)
    jax.block_until_ready((loss_seq, loss_par))
    assert jnp.allclose(loss_seq, ref, rtol=1e-5, atol=1e-5), (loss_seq, ref)
    assert jnp.allclose(loss_par, ref, rtol=1e-5, atol=1e-5), (loss_par, ref)

    # bf16 inputs stream natively and are upcast to f32 inside the kernel.
    inputs_bf = inputs.astype(jnp.bfloat16)
    ref_bf = _reference(inputs_bf, targets, smooth=1.0)
    loss_bf = dice_bce_loss(inputs_bf, targets, smooth=1.0)
    jax.block_until_ready(loss_bf)
    assert jnp.allclose(loss_bf, ref_bf, rtol=1e-3, atol=1e-3), (loss_bf, ref_bf)

    # Ragged size (not a multiple of 128): <128-element tail in plain JAX,
    # partial last block masked in-kernel; plus the single-log binary fast path.
    shape2 = (2, 3, 15, 17)
    inputs2 = jax.random.uniform(k3, shape2, dtype=jnp.float32,
                                 minval=1e-4, maxval=1.0 - 1e-4)
    targets2 = (jax.random.uniform(k4, shape2) > 0.5).astype(jnp.float32)
    ref2 = _reference(inputs2, targets2, smooth=1.0)

    loss2 = dice_bce_loss(inputs2, targets2, smooth=1.0)
    loss2_fast = dice_bce_loss(inputs2, targets2, smooth=1.0,
                               assume_binary_targets=True)
    jax.block_until_ready((loss2, loss2_fast))
    assert jnp.allclose(loss2, ref2, rtol=1e-5, atol=1e-5), (loss2, ref2)
    assert jnp.allclose(loss2_fast, ref2, rtol=1e-5, atol=1e-5), (loss2_fast, ref2)

    print("KERNEL_OK")
</pallas_src>

<mosaic_0001>
module attributes {stable_mosaic.version = 11 : i64} {
  func.func @_dice_bce_kernel(%arg0: i32, %arg1: i32, %arg2: memref<16x128xf32, #tpu.memory_space<vmem>>, %arg3: memref<16x128xf32, #tpu.memory_space<vmem>>, %arg4: memref<1x1x1xf32, #tpu.memory_space<vmem>>, %arg5: memref<1x1x1xf32, #tpu.memory_space<vmem>>, %arg6: memref<1x1x1xf32, #tpu.memory_space<vmem>>, %arg7: memref<8x128xf32, #tpu.memory_space<vmem>>, %arg8: memref<8x128xf32, #tpu.memory_space<vmem>>, %arg9: memref<8x128xf32, #tpu.memory_space<vmem>>) attributes {dimension_semantics = [#tpu.dimension_semantics<parallel>, #tpu.dimension_semantics<arbitrary>], iteration_bounds = array<i64: 1, 1>, scalar_prefetch = 0 : i64, scratch_operands = 3 : i64, tpu.core_type = #tpu.core_type<tc>, window_params = [{transform_indices = @transform_0, window_bounds = array<i64: 16, 128>}, {transform_indices = @transform_1, window_bounds = array<i64: 16, 128>}, {transform_indices = @transform_2, window_bounds = array<i64: 1, 1, 1>}, {transform_indices = @transform_3, window_bounds = array<i64: 1, 1, 1>}, {transform_indices = @transform_4, window_bounds = array<i64: 1, 1, 1>}]} {
    %c0_i32 = arith.constant 0 : i32
    %0 = arith.cmpi eq, %arg1, %c0_i32 : i32
    %1 = arith.extui %0 : i1 to i32
    %c0_i32_0 = arith.constant 0 : i32
    %2 = arith.cmpi ne, %1, %c0_i32_0 : i32
    scf.if %2 {
      %cst_24 = arith.constant 0.000000e+00 : f32
      %40 = vector.broadcast %cst_24 : f32 to vector<8x128xf32>
      %c0_25 = arith.constant 0 : index
      %c0_26 = arith.constant 0 : index
      %41 = vector.load %arg7[%c0_25, %c0_26] : memref<8x128xf32, #tpu.memory_space<vmem>>, vector<8x128xf32>
      tpu.vector_store %arg7[%c0_25, %c0_26], %40 {strides = array<i32>} : memref<8x128xf32, #tpu.memory_space<vmem>>, vector<8x128xf32>,
      %cst_27 = arith.constant 0.000000e+00 : f32
      %42 = vector.broadcast %cst_27 : f32 to vector<8x128xf32>
      %c0_28 = arith.constant 0 : index
      %c0_29 = arith.constant 0 : index
      %43 = vector.load %arg8[%c0_28, %c0_29] : memref<8x128xf32, #tpu.memory_space<vmem>>, vector<8x128xf32>
      tpu.vector_store %arg8[%c0_28, %c0_29], %42 {strides = array<i32>} : memref<8x128xf32, #tpu.memory_space<vmem>>, vector<8x128xf32>,
      %cst_30 = arith.constant 0.000000e+00 : f32
      %44 = vector.broadcast %cst_30 : f32 to vector<8x128xf32>
      %c0_31 = arith.constant 0 : index
      %c0_32 = arith.constant 0 : index
      %45 = vector.load %arg9[%c0_31, %c0_32] : memref<8x128xf32, #tpu.memory_space<vmem>>, vector<8x128xf32>
      tpu.vector_store %arg9[%c0_31, %c0_32], %44 {strides = array<i32>} : memref<8x128xf32, #tpu.memory_space<vmem>>, vector<8x128xf32>,
    } else {
    }
    %cst = arith.constant 0.000000e+00 : f32
    %3 = vector.broadcast %cst : f32 to vector<8x128xf32>
    %c0 = arith.constant 0 : index
    %c0_1 = arith.constant 0 : index
    %4 = vector.load %arg2[%c0, %c0_1] : memref<16x128xf32, #tpu.memory_space<vmem>>, vector<16x128xf32>
    %c0_2 = arith.constant 0 : index
    %c0_3 = arith.constant 0 : index
    %5 = vector.load %arg3[%c0_2, %c0_3] : memref<16x128xf32, #tpu.memory_space<vmem>>, vector<16x128xf32>
    %6 = math.log %4 : vector<16x128xf32>
    %cst_4 = arith.constant -1.000000e+02 : f32
    %7 = vector.broadcast %cst_4 : f32 to vector<16x128xf32>
    %8 = arith.maximumf %6, %7 : vector<16x128xf32>
    %cst_5 = arith.constant 1.000000e+00 : f32
    %9 = vector.broadcast %cst_5 : f32 to vector<16x128xf32>
    %10 = arith.subf %9, %4 : vector<16x128xf32>
    %11 = math.log %10 : vector<16x128xf32>
    %cst_6 = arith.constant -1.000000e+02 : f32
    %12 = vector.broadcast %cst_6 : f32 to vector<16x128xf32>
    %13 = arith.maximumf %11, %12 : vector<16x128xf32>
    %14 = arith.subf %8, %13 : vector<16x128xf32>
    %15 = arith.mulf %5, %14 : vector<16x128xf32>
    %16 = arith.addf %13, %15 : vector<16x128xf32>
    %17 = arith.mulf %4, %5 : vector<16x128xf32>
    %18 = vector.shape_cast %17 : vector<16x128xf32> to vector<2x8x128xf32>
    %cst_7 = arith.constant dense<0.000000e+00> : vector<8x128xf32>
    %19 = vector.multi_reduction <add>, %18, %cst_7 [0] : vector<2x8x128xf32> to vector<8x128xf32>
    %20 = arith.addf %3, %19 : vector<8x128xf32>
    %21 = arith.addf %4, %5 : vector<16x128xf32>
    %22 = vector.shape_cast %21 : vector<16x128xf32> to vector<2x8x128xf32>
    %cst_8 = arith.constant dense<0.000000e+00> : vector<8x128xf32>
    %23 = vector.multi_reduction <add>, %22, %cst_8 [0] : vector<2x8x128xf32> to vector<8x128xf32>
    %24 = arith.addf %3, %23 : vector<8x128xf32>
    %25 = vector.shape_cast %16 : vector<16x128xf32> to vector<2x8x128xf32>
    %cst_9 = arith.constant dense<0.000000e+00> : vector<8x128xf32>
    %26 = vector.multi_reduction <add>, %25, %cst_9 [0] : vector<2x8x128xf32> to vector<8x128xf32>
    %27 = arith.addf %3, %26 : vector<8x128xf32>
    %c0_10 = arith.constant 0 : index
    %c0_11 = arith.constant 0 : index
    %28 = vector.load %arg7[%c0_10, %c0_11] : memref<8x128xf32, #tpu.memory_space<vmem>>, vector<8x128xf32>
    %29 = arith.addf %28, %20 : vector<8x128xf32>
    %c0_12 = arith.constant 0 : index
    %c0_13 = arith.constant 0 : index
    %30 = vector.load %arg7[%c0_12, %c0_13] : memref<8x128xf32, #tpu.memory_space<vmem>>, vector<8x128xf32>
    tpu.vector_store %arg7[%c0_12, %c0_13], %29 {strides = array<i32>} : memref<8x128xf32, #tpu.memory_space<vmem>>, vector<8x128xf32>,
    %c0_14 = arith.constant 0 : index
    %c0_15 = arith.constant 0 : index
    %31 = vector.load %arg8[%c0_14, %c0_15] : memref<8x128xf32, #tpu.memory_space<vmem>>, vector<8x128xf32>
    %32 = arith.addf %31, %24 : vector<8x128xf32>
    %c0_16 = arith.constant 0 : index
    %c0_17 = arith.constant 0 : index
    %33 = vector.load %arg8[%c0_16, %c0_17] : memref<8x128xf32, #tpu.memory_space<vmem>>, vector<8x128xf32>
    tpu.vector_store %arg8[%c0_16, %c0_17], %32 {strides = array<i32>} : memref<8x128xf32, #tpu.memory_space<vmem>>, vector<8x128xf32>,
    %c0_18 = arith.constant 0 : index
    %c0_19 = arith.constant 0 : index
    %34 = vector.load %arg9[%c0_18, %c0_19] : memref<8x128xf32, #tpu.memory_space<vmem>>, vector<8x128xf32>
    %35 = arith.addf %34, %27 : vector<8x128xf32>
    %c0_20 = arith.constant 0 : index
    %c0_21 = arith.constant 0 : index
    %36 = vector.load %arg9[%c0_20, %c0_21] : memref<8x128xf32, #tpu.memory_space<vmem>>, vector<8x128xf32>
    tpu.vector_store %arg9[%c0_20, %c0_21], %35 {strides = array<i32>} : memref<8x128xf32, #tpu.memory_space<vmem>>, vector<8x128xf32>,
    %c0_i32_22 = arith.constant 0 : i32
    %37 = arith.cmpi eq, %arg1, %c0_i32_22 : i32
    %38 = arith.extui %37 : i1 to i32
    %c0_i32_23 = arith.constant 0 : i32
    %39 = arith.cmpi ne, %38, %c0_i32_23 : i32
    scf.if %39 {
      %c0_24 = arith.constant 0 : index
      %c0_25 = arith.constant 0 : index
      %40 = vector.load %arg7[%c0_24, %c0_25] : memref<8x128xf32, #tpu.memory_space<vmem>>, vector<8x128xf32>
      %41 = vector.shape_cast %40 : vector<8x128xf32> to vector<1x8x128xf32>
      %cst_26 = arith.constant dense<0.000000e+00> : vector<1xf32>
      %42 = vector.multi_reduction <add>, %41, %cst_26 [1, 2] : vector<1x8x128xf32> to vector<1xf32>
      %43 = vector.shape_cast %42 : vector<1xf32> to vector<1x1x1xf32>
      %44 = vector.extract %43[0, 0, 0] : f32 from vector<1x1x1xf32>
      %45 = vector.broadcast %44 : f32 to vector<1x1x1xf32>
      %c0_27 = arith.constant 0 : index
      %c0_28 = arith.constant 0 : index
      %c0_29 = arith.constant 0 : index
      %46 = vector.load %arg4[%c0_27, %c0_28, %c0_29] : memref<1x1x1xf32, #tpu.memory_space<vmem>>, vector<1x1x1xf32>
      tpu.vector_store %arg4[%c0_27, %c0_28, %c0_29], %45 {strides = array<i32>} : memref<1x1x1xf32, #tpu.memory_space<vmem>>, vector<1x1x1xf32>,
      %c0_30 = arith.constant 0 : index
      %c0_31 = arith.constant 0 : index
      %47 = vector.load %arg8[%c0_30, %c0_31] : memref<8x128xf32, #tpu.memory_space<vmem>>, vector<8x128xf32>
      %48 = vector.shape_cast %47 : vector<8x128xf32> to vector<1x8x128xf32>
      %cst_32 = arith.constant dense<0.000000e+00> : vector<1xf32>
      %49 = vector.multi_reduction <add>, %48, %cst_32 [1, 2] : vector<1x8x128xf32> to vector<1xf32>
      %50 = vector.shape_cast %49 : vector<1xf32> to vector<1x1x1xf32>
      %51 = vector.extract %50[0, 0, 0] : f32 from vector<1x1x1xf32>
      %52 = vector.broadcast %51 : f32 to vector<1x1x1xf32>
      %c0_33 = arith.constant 0 : index
      %c0_34 = arith.constant 0 : index
      %c0_35 = arith.constant 0 : index
      %53 = vector.load %arg5[%c0_33, %c0_34, %c0_35] : memref<1x1x1xf32, #tpu.memory_space<vmem>>, vector<1x1x1xf32>
      tpu.vector_store %arg5[%c0_33, %c0_34, %c0_35], %52 {strides = array<i32>} : memref<1x1x1xf32, #tpu.memory_space<vmem>>, vector<1x1x1xf32>,
      %c0_36 = arith.constant 0 : index
      %c0_37 = arith.constant 0 : index
      %54 = vector.load %arg9[%c0_36, %c0_37] : memref<8x128xf32, #tpu.memory_space<vmem>>, vector<8x128xf32>
      %55 = vector.shape_cast %54 : vector<8x128xf32> to vector<1x8x128xf32>
      %cst_38 = arith.constant dense<0.000000e+00> : vector<1xf32>
      %56 = vector.multi_reduction <add>, %55, %cst_38 [1, 2] : vector<1x8x128xf32> to vector<1xf32>
      %57 = vector.shape_cast %56 : vector<1xf32> to vector<1x1x1xf32>
      %58 = vector.extract %57[0, 0, 0] : f32 from vector<1x1x1xf32>
      %59 = vector.broadcast %58 : f32 to vector<1x1x1xf32>
      %c0_39 = arith.constant 0 : index
      %c0_40 = arith.constant 0 : index
      %c0_41 = arith.constant 0 : index
      %60 = vector.load %arg6[%c0_39, %c0_40, %c0_41] : memref<1x1x1xf32, #tpu.memory_space<vmem>>, vector<1x1x1xf32>
      tpu.vector_store %arg6[%c0_39, %c0_40, %c0_41], %59 {strides = array<i32>} : memref<1x1x1xf32, #tpu.memory_space<vmem>>, vector<1x1x1xf32>,
    } else {
    }
    return
  }
  func.func @transform_0(%arg0: i32, %arg1: i32) -> (i32, i32) {
    %c1_i32 = arith.constant 1 : i32
    %0 = arith.muli %arg0, %c1_i32 : i32
    %1 = arith.addi %0, %arg1 : i32
    %c0_i32 = arith.constant 0 : i32
    %c0_i32_0 = arith.constant 0 : i32
    return %1, %c0_i32 : i32, i32
  }
  func.func @transform_1(%arg0: i32, %arg1: i32) -> (i32, i32) {
    %c1_i32 = arith.constant 1 : i32
    %0 = arith.muli %arg0, %c1_i32 : i32
    %1 = arith.addi %0, %arg1 : i32
    %c0_i32 = arith.constant 0 : i32
    %c0_i32_0 = arith.constant 0 : i32
    return %1, %c0_i32 : i32, i32
  }
  func.func @transform_2(%arg0: i32, %arg1: i32) -> (i32, i32, i32) {
    %c0_i32 = arith.constant 0 : i32
    %c0_i32_0 = arith.constant 0 : i32
    %c0_i32_1 = arith.constant 0 : i32
    return %arg0, %c0_i32, %c0_i32_0 : i32, i32, i32
  }
  func.func @transform_3(%arg0: i32, %arg1: i32) -> (i32, i32, i32) {
    %c0_i32 = arith.constant 0 : i32
    %c0_i32_0 = arith.constant 0 : i32
    %c0_i32_1 = arith.constant 0 : i32
    return %arg0, %c0_i32, %c0_i32_0 : i32, i32, i32
  }
  func.func @transform_4(%arg0: i32, %arg1: i32) -> (i32, i32, i32) {
    %c0_i32 = arith.constant 0 : i32
    %c0_i32_0 = arith.constant 0 : i32
    %c0_i32_1 = arith.constant 0 : i32
    return %arg0, %c0_i32, %c0_i32_0 : i32, i32, i32
  }
}

</mosaic_0001>

<bundles_post_ra>
// kernel: tpu_custom_call.1
= control target key start
LH: loop header
LB: loop body
LE: loop exit
PB: predicated region body
PF: predicated region fallthrough
CT: control target
= control target key end

     0   :  { %10 = vsyncpa [#allocation6], 0  ;;  %s423_s0 = inlined_call_operand.hbm [shape: f32[16,128], index: 0, kind: input, shape index: {}]   ;;  %s424_s1 = inlined_call_operand.hbm [shape: f32[16,128], index: 1, kind: input, shape index: {}]   ;;  %s425_s2 = inlined_call_operand.hbm [shape: f32[1,1,1], index: 2, kind: output, shape index: {0}]   ;;  %s426_s3 = inlined_call_operand.hbm [shape: f32[1,1,1], index: 3, kind: output, shape index: {1}]   ;;  %s427_s4 = inlined_call_operand.hbm [shape: f32[1,1,1], index: 4, kind: output, shape index: {2}]  }
   0x1   :  { %11 = vsyncpa [#allocation9], 0 }
   0x2   :  { %12 = vsyncpa [#allocation7], 0 }
   0x3   :  { %13 = vsyncpa [#allocation12], 0  ;;  %s328_s15 = smov [#allocation5]   ;;  %s210_s19 = scalar_lea.hbm %s423_s0, 256 }
   0x4   :  { %s23_s16 = sshll.u32 %s328_s15, 4  ;;  %p211_p0 = scmp.ne.s32.totalorder %s423_s0, %s210_s19  ;;  %s24_s16 = int_to_ptr.vmem [resolvable:$true] %s23_s16 }
   0x5   :  { %p214_p1 = scmp.lt.u32.totalorder %s210_s19, %s423_s0 }
   0x7   :  { %p216_p2 = pnand %p214_p1, %p211_p0 }
   0x9   :  { %219 = shalt.err (!%p216_p2)
}
   0xa   :  { %s220_s24 = scalar_lea.vmem %s24_s16, 256  ;;  %p225_p4 = scmp.lt.s32.totalorder %s24_s16, %s24_s16 }
   0xb   :  { %p221_p3 = scmp.ne.s32.totalorder %s24_s16, %s220_s24  ;;  %p226_p5 = scmp.lt.s32.totalorder %s220_s24, %s220_s24 }
   0xd   :  { %p227_p6 = por %p226_p5, %p225_p4 }
   0xf   :  { %p228_p7 = pnand %p227_p6, %p221_p3 }
  0x11   :  { %231 = shalt.err (!%p228_p7)
}
  0x12   :  { %s329_s25 = smov 128   ;;  %s330_s26 = smov 8  }
  0x13   :  { %29 = dma.hbm_to_vmem [thread:$0]  %s423_s0, 256, %s24_s16, [#allocation6], %s329_s25, %s329_s25, %s330_s26  }
  0x14   :  { %s331_s29 = smov [#allocation8]   ;;  %s232_s7 = scalar_lea.hbm %s424_s1, 256 }
  0x15   :  { %s39_s30 = sshll.u32 %s331_s29, 4  ;;  %p233_p8 = scmp.ne.s32.totalorder %s424_s1, %s232_s7  ;;  %s40_s30 = int_to_ptr.vmem [resolvable:$true] %s39_s30 }
  0x16   :  { %p236_p9 = scmp.lt.u32.totalorder %s232_s7, %s424_s1 }
  0x18   :  { %p238_p10 = pnand %p236_p9, %p233_p8 }
  0x1a   :  { %241 = shalt.err (!%p238_p10)
}
  0x1b   :  { %s242_s12 = scalar_lea.vmem %s40_s30, 256  ;;  %p247_p12 = scmp.lt.s32.totalorder %s40_s30, %s40_s30 }
  0x1c   :  { %p243_p11 = scmp.ne.s32.totalorder %s40_s30, %s242_s12  ;;  %p248_p13 = scmp.lt.s32.totalorder %s242_s12, %s242_s12 }
  0x1e   :  { %p249_p0 = por %p248_p13, %p247_p12 }
  0x20   :  { %p250_p1 = pnand %p249_p0, %p243_p11 }
  0x22   :  { %253 = shalt.err (!%p250_p1)
}
  0x23   :  { %45 = dma.hbm_to_vmem [thread:$0]  %s424_s1, 256, %s40_s30, [#allocation9], %s329_s25, %s329_s25, %s330_s26  }
  0x24   :  { %320 = dma.done.wait [#allocation6], 256  }
  0x25   :  { %321 = vsyncadd [#allocation6], 4294967040 }
  0x26   :  { %322 = dma.done.wait [#allocation9], 256  }
  0x27   :  { %323 = vsyncadd [#allocation9], 4294967040  ;;  %v63_v0 = vld [vmem:[#allocation5] sm:$0xff]  ;;  %v64_v1 = vld [vmem:[#allocation5 + $0x8] sm:$0xff]  ;;  %s332_s1 = smov [#allocation10]   ;;  %vm120_vm0 = vcmask 0  }
  0x28   :  { %v65_v2 = vld [vmem:[#allocation8] sm:$0xff]  ;;  %v66_v3 = vld [vmem:[#allocation8 + $0x8] sm:$0xff]  ;;  %202 = vlog2.f32 %v64_v1  ;;  %v73_v6 = vsub.f32 1.0, %v63_v0  ;;  %v74_v9 = vsub.f32 1.0, %v64_v1  ;;  %s152_s14 = sshll.u32 %s332_s1, 4  ;;  %s333_s16 = smov [#allocation11]   ;;  %s153_s14 = int_to_ptr.vmem [resolvable:$true] %s152_s14 }
  0x29   :  { %v87_v4 = vmul.f32 %v65_v2, %v63_v0  ;;  %v91_v5 = vadd.f32 %v65_v2, %v63_v0  ;;  %v88_v7 = vmul.f32 %v66_v3, %v64_v1  ;;  %204 = vlog2.f32 %v63_v0  ;;  %s162_s17 = sshll.u32 %s333_s16, 4  ;;  %s254_s18 = scalar_lea.vmem %s153_s14, 16  ;;  %s163_s17 = int_to_ptr.vmem [resolvable:$true] %s162_s17 }
  0x2a   :  { %v92_v8 = vadd.f32 %v66_v3, %v64_v1  ;;  %206 = vlog2.f32 %v73_v6  ;;  %p255_p2 = scmp.ne.s32.totalorder %s153_s14, %s254_s18  ;;  %s258_s19 = scalar_lea.vmem %s153_s14, 32 }
  0x2b   :  { %v89_v10 = vadd.f32 %v88_v7, %v87_v4  ;;  %208 = vlog2.f32 %v74_v9  ;;  %p259_p3 = scmp.lt.s32.totalorder %s153_s14, %s153_s14  ;;  %p260_p4 = scmp.lt.s32.totalorder %s258_s19, %s254_s18 }
  0x2c   :  { %v93_v11 = vadd.f32 %v92_v8, %v91_v5 }
  0x2d   :  { %110 = vadd.xlane.f32.xlu0 %v89_v10  ;;  %p261_p5 = por %p260_p4, %p259_p3 }
  0x2f   :  { %p262_p6 = pnand %p261_p5, %p255_p2 }
  0x31   :  { %123 = vadd.xlane.f32.xlu0 %v93_v11 }
  0x32   :  { %v203_v12 = vpop.eup %202 }
  0x33   :  { %v205_v13 = vpop.eup %204  ;;  %v70_v14 = vmul.f32 0.6931472, %v203_v12 }
  0x34   :  { %v207_v15 = vpop.eup %206  ;;  %v68_v16 = vmul.f32 0.6931472, %v205_v13 }
  0x35   :  { %v209_v17 = vpop.eup %208  ;;  %v76_v18 = vmul.f32 0.6931472, %v207_v15  ;;  %v72_v20 = vmax.f32 %v70_v14, -100.0 }
  0x36   :  { %v71_v19 = vmax.f32 %v68_v16, -100.0  ;;  %v78_v21 = vmul.f32 0.6931472, %v209_v17 }
  0x37   :  { %v79_v22 = vmax.f32 %v76_v18, -100.0 }
  0x38   :  { %v80_v23 = vmax.f32 %v78_v21, -100.0 }
  0x39   :  { %v81_v24 = vsub.f32 %v71_v19, %v79_v22 }
  0x3a   :  { %v82_v25 = vsub.f32 %v72_v20, %v80_v23 }
  0x3b   :  { %v83_v26 = vmul.f32 %v81_v24, %v65_v2 }
  0x3c   :  { %v84_v27 = vmul.f32 %v82_v25, %v66_v3 }
  0x3d   :  { %v85_v28 = vadd.f32 %v83_v26, %v79_v22 }
  0x3e   :  { %v86_v29 = vadd.f32 %v84_v27, %v80_v23 }
  0x40   :  { %v95_v30 = vadd.f32 %v86_v29, %v85_v28 }
  0x42   :  { %135 = vadd.xlane.f32.xlu1 %v95_v30 }
  0xba   :  { %v111_v31 = vpop.xlane.xlu0 %110 }
  0xbb   :  { %v112_v32 = vrot.slane %v111_v31, 4 }
  0xbd   :  { %v113_v33 = vadd.f32 %v112_v32, %v111_v31 }
  0xbe   :  { %v124_v34 = vpop.xlane.xlu0 %123 }
  0xbf   :  { %v114_v35 = vrot.slane %v113_v33, 2  ;;  %v125_v36 = vrot.slane %v124_v34, 4 }
  0xc1   :  { %v126_v37 = vadd.f32 %v125_v36, %v124_v34  ;;  %v115_v38 = vadd.f32 %v114_v35, %v113_v33 }
  0xc3   :  { %v127_v39 = vrot.slane %v126_v37, 2  ;;  %v116_v40 = vrot.slane %v115_v38, 1 }
  0xc5   :  { %v128_v41 = vadd.f32 %v127_v39, %v126_v37  ;;  %v117_v42 = vadd.f32 %v116_v40, %v115_v38 }
  0xc7   :  { %189 = vpush %v117_v42  ;;  %v129_v43 = vrot.slane %v128_v41, 1 }
  0xc9   :  { %v130_v44 = vadd.f32 %v129_v43, %v128_v41 }
  0xcb   :  { %191 = vpush %v130_v44 }
  0xcf   :  { %v136_v45 = vpop.xlane.xlu1 %135 }
  0xd0   :  { %v137_v46 = vrot.slane %v136_v45, 4 }
  0xd2   :  { %v138_v47 = vadd.f32 %v137_v46, %v136_v45 }
  0xd4   :  { %v139_v48 = vrot.slane %v138_v47, 2 }
  0xd6   :  { %v140_v49 = vadd.f32 %v139_v48, %v138_v47 }
  0xd8   :  { %v141_v50 = vrot.slane %v140_v49, 1 }
  0xda   :  { %v142_v51 = vadd.f32 %v141_v50, %v140_v49 }
  0xdc   :  { %193 = vpush %v142_v51 }
  0xf8   :  { %s190_s15 = spop %189 }
  0xf9   :  { %v119_v52 = vstv %s190_s15 }
  0xfa   :  { %121 = vst.msk [vmem:[#allocation10] sm:$0x1] %vm120_vm0, %v119_v52 }
  0xfb   :  { %265 = shalt.err (!%p262_p6)
}
  0xfc   :  { %s266_s22 = scalar_lea.hbm %s425_s2, 16 }
  0xfd   :  { %p267_p7 = scmp.ne.s32.totalorder %s425_s2, %s266_s22  ;;  %p270_p8 = scmp.lt.u32.totalorder %s266_s22, %s425_s2 }
  0xff   :  { %p272_p9 = pnand %p270_p8, %p267_p7 }
 0x101   :  { %275 = shalt.err (!%p272_p9)
}
 0x102   :  { %155 = dma.vmem_to_hbm [thread:$0]  %s153_s14, 16, %s425_s2, [#allocation7]  }
 0x103   :  { %s192_s29 = spop %191  ;;  %s276_s30 = scalar_lea.vmem %s163_s17, 16 }
 0x104   :  { %v132_v53 = vstv %s192_s29  ;;  %p277_p10 = scmp.ne.s32.totalorder %s163_s17, %s276_s30  ;;  %s280_s5 = scalar_lea.vmem %s163_s17, 32 }
 0x105   :  { %133 = vst.msk [vmem:[#allocation11] sm:$0x1] %vm120_vm0, %v132_v53  ;;  %p281_p11 = scmp.lt.s32.totalorder %s163_s17, %s163_s17  ;;  %p282_p12 = scmp.lt.s32.totalorder %s280_s5, %s276_s30 }
 0x107   :  { %p283_p13 = por %p282_p12, %p281_p11 }
 0x109   :  { %p284_p0 = pnand %p283_p13, %p277_p10 }
 0x10b   :  { %287 = shalt.err (!%p284_p0)
}
 0x10c   :  { %s288_s8 = scalar_lea.hbm %s426_s3, 16 }
 0x10d   :  { %p289_p1 = scmp.ne.s32.totalorder %s426_s3, %s288_s8  ;;  %p292_p2 = scmp.lt.u32.totalorder %s288_s8, %s426_s3 }
 0x10f   :  { %p294_p3 = pnand %p292_p2, %p289_p1 }
 0x111   :  { %297 = shalt.err (!%p294_p3)
}
 0x112   :  { %165 = dma.vmem_to_hbm [thread:$0]  %s163_s17, 16, %s426_s3, [#allocation12]  }
 0x113   :  { %s334_s13 = smov [#allocation13]   ;;  %s194_s14 = spop %193 }
 0x114   :  { %s172_s1 = sshll.u32 %s334_s13, 4  ;;  %v144_v54 = vstv %s194_s14  ;;  %s173_s1 = int_to_ptr.vmem [resolvable:$true] %s172_s1 }
 0x115   :  { %145 = vst.msk [vmem:[#allocation13] sm:$0x1] %vm120_vm0, %v144_v54  ;;  %s298_s15 = scalar_lea.vmem %s173_s1, 16  ;;  %s302_s16 = scalar_lea.vmem %s173_s1, 32 }
 0x116   :  { %p299_p4 = scmp.ne.s32.totalorder %s173_s1, %s298_s15  ;;  %p303_p5 = scmp.lt.s32.totalorder %s173_s1, %s173_s1 }
 0x117   :  { %p304_p6 = scmp.lt.s32.totalorder %s302_s16, %s298_s15 }
 0x119   :  { %p305_p7 = por %p304_p6, %p303_p5 }
 0x11b   :  { %p306_p8 = pnand %p305_p7, %p299_p4 }
 0x11d   :  { %309 = shalt.err (!%p306_p8)
}
 0x11e   :  { %s310_s20 = scalar_lea.hbm %s427_s4, 16 }
 0x11f   :  { %p311_p9 = scmp.ne.s32.totalorder %s427_s4, %s310_s20  ;;  %p314_p10 = scmp.lt.u32.totalorder %s310_s20, %s427_s4 }
 0x121   :  { %p316_p11 = pnand %p314_p10, %p311_p9 }
 0x123   :  { %319 = shalt.err (!%p316_p11)
}
 0x124   :  { %175 = dma.vmem_to_hbm [thread:$0]  %s173_s1, 16, %s427_s4, [#allocation12]  }
 0x125   :  { %324 = dma.done.wait [#allocation7], 16  }
 0x126   :  { %325 = vsyncadd [#allocation7], 4294967280 }
 0x127   :  { %326 = dma.done.wait [#allocation12], 32  }
 0x128   :  { %327 = vsyncadd [#allocation12], 4294967264 }
 0x129   :  { %185 = vsyncpa [#allocation6], 1 }
 0x12a   :  { %186 = vsyncpa [#allocation9], 1 }
 0x12b   :  { %187 = vsyncpa [#allocation7], 1 }
 0x12c   :  { %188 = vsyncpa [#allocation12], 1 }

</bundles_post_ra>
